<compile_context>
chip_gen: v6e
topology: v6e:2x2x1
jax: 0.10.0
libtpu: 0.0.40
codegen_flags: <defaults>
</compile_context>

<pallas_src>
import jax
import jax.numpy as jnp
from jax.experimental import pallas as pl
from jax.experimental.pallas import tpu as pltpu


def _round_up(x: int, m: int) -> int:
    return ((x + m - 1) // m) * m


def mlp_kernel(x_ref, w1_ref, b1_ref, w2_ref, b2_ref,
               w3_ref, b3_ref, w4_ref, b4_ref, o_ref):
    # x tile (TB, F) bf16, W1 bf16 -> MXU bf16 matmul with f32 accumulation.
    h = jnp.dot(x_ref[...], w1_ref[...],
                preferred_element_type=jnp.float32) + b1_ref[...]
    h = jnp.maximum(h, 0.0)
    # Tiny tail layers (23 -> 15 -> 10 -> n_classes): negligible FLOPs, keep f32.
    h = jnp.dot(h, w2_ref[...], preferred_element_type=jnp.float32) + b2_ref[...]
    h = jnp.maximum(h, 0.0)
    h = jnp.dot(h, w3_ref[...], preferred_element_type=jnp.float32) + b3_ref[...]
    h = jnp.maximum(h, 0.0)
    h = jnp.dot(h, w4_ref[...], preferred_element_type=jnp.float32) + b4_ref[...]
    o_ref[...] = h.astype(o_ref.dtype)


def mlp_forward(x, params, *, input_img=True, block_b=512):
    """x: (B, C, H, W) if input_img else (B, F). Returns (B, n_classes) float32."""
    if input_img:
        x = x.reshape(x.shape[0], -1)  # same ordering as torch .view(B, -1) on NCHW
    (w1, b1), (w2, b2), (w3, b3), (w4, b4) = params
    B, F = x.shape
    n_classes = w4.shape[1]

    # bf16 on the bandwidth-heavy path (x and W1); everything else stays f32.
    x_bf16 = x.astype(jnp.bfloat16)
    w1_bf16 = w1.astype(jnp.bfloat16)

    # Batch tile: multiple of 16 (bf16 sublane packing), capped at block_b rows.
    tb = min(block_b, _round_up(max(B, 1), 16))
    b_pad = _round_up(B, tb)
    if b_pad != B:
        x_bf16 = jnp.pad(x_bf16, ((0, b_pad - B), (0, 0)))
    grid = (b_pad // tb,)

    const2d = lambda i: (0, 0)  # weights/biases: VMEM-resident across grid steps

    flops = 2 * b_pad * (F * 23 + 23 * 15 + 15 * 10 + 10 * n_classes)
    bytes_accessed = (
        x_bf16.size * 2 + w1_bf16.size * 2
        + sum(int(a.size) * 4 for a in (b1, w2, b2, w3, b3, w4, b4))
        + b_pad * n_classes * 4
    )

    out = pl.pallas_call(
        mlp_kernel,
        out_shape=jax.ShapeDtypeStruct((b_pad, n_classes), jnp.float32),
        grid=grid,
        in_specs=[
            pl.BlockSpec((tb, F), lambda i: (i, 0)),   # stream x tiles over batch
            pl.BlockSpec(w1_bf16.shape, const2d),
            pl.BlockSpec(b1.shape, const2d),
            pl.BlockSpec(w2.shape, const2d),
            pl.BlockSpec(b2.shape, const2d),
            pl.BlockSpec(w3.shape, const2d),
            pl.BlockSpec(b3.shape, const2d),
            pl.BlockSpec(w4.shape, const2d),
            pl.BlockSpec(b4.shape, const2d),
        ],
        out_specs=pl.BlockSpec((tb, n_classes), lambda i: (i, 0)),
        compiler_params=pltpu.CompilerParams(
            dimension_semantics=("parallel",)),  # v7x: shard batch across both TCs
        cost_estimate=pl.CostEstimate(
            flops=flops, transcendentals=0, bytes_accessed=bytes_accessed),
    )(x_bf16, w1_bf16, b1, w2, b2, w3, b3, w4, b4)

    return out[:B]


def init_params(key, in_features, n_classes):
    """nn.Linear-style uniform(-1/sqrt(fan_in), 1/sqrt(fan_in)) init.
    Weights stored as (in, out); biases as (1, out) for clean 2D broadcast."""
    dims = [in_features, 23, 15, 10, n_classes]
    params = []
    for i in range(4):
        fan_in, fan_out = dims[i], dims[i + 1]
        key, kw, kb = jax.random.split(key, 3)
        bound = 1.0 / jnp.sqrt(jnp.float32(fan_in))
        w = jax.random.uniform(kw, (fan_in, fan_out), jnp.float32, -bound, bound)
        b = jax.random.uniform(kb, (1, fan_out), jnp.float32, -bound, bound)
        params.append((w, b))
    return params


def reference_forward(x, params, *, input_img=True):
    """Pure-JAX reference with the same mixed precision as the kernel."""
    if input_img:
        x = x.reshape(x.shape[0], -1)
    (w1, b1), (w2, b2), (w3, b3), (w4, b4) = params
    h = jnp.dot(x.astype(jnp.bfloat16), w1.astype(jnp.bfloat16),
                preferred_element_type=jnp.float32) + b1
    h = jnp.maximum(h, 0.0)
    h = jnp.maximum(h @ w2 + b2, 0.0)
    h = jnp.maximum(h @ w3 + b3, 0.0)
    return h @ w4 + b4


if __name__ == "__main__":
    # Module config: channels=4, encoded_size=256 (=16*16) => in_features = 1024
    batch, channels, H, W = 2, 4, 16, 16
    n_classes = 2
    in_features = channels * H * W

    key = jax.random.PRNGKey(0)
    key, kx = jax.random.split(key)
    x = jax.random.normal(kx, (batch, channels, H, W), jnp.float32)

    params = init_params(key, in_features, n_classes)

    out = mlp_forward(x, params)
    out = jax.block_until_ready(out)

    ref = reference_forward(x, params)
    assert out.shape == (batch, n_classes)
    assert jnp.allclose(out, ref, atol=2e-2, rtol=2e-2), "mismatch vs JAX reference"

    print("KERNEL_OK")
</pallas_src>

<mosaic_0001>
module attributes {stable_mosaic.version = 11 : i64} {
  func.func @mlp_kernel(%arg0: i32, %arg1: memref<16x1024xbf16, #tpu.memory_space<vmem>>, %arg2: memref<1024x23xbf16, #tpu.memory_space<vmem>>, %arg3: memref<1x23xf32, #tpu.memory_space<vmem>>, %arg4: memref<23x15xf32, #tpu.memory_space<vmem>>, %arg5: memref<1x15xf32, #tpu.memory_space<vmem>>, %arg6: memref<15x10xf32, #tpu.memory_space<vmem>>, %arg7: memref<1x10xf32, #tpu.memory_space<vmem>>, %arg8: memref<10x2xf32, #tpu.memory_space<vmem>>, %arg9: memref<1x2xf32, #tpu.memory_space<vmem>>, %arg10: memref<16x2xf32, #tpu.memory_space<vmem>>) attributes {dimension_semantics = [#tpu.dimension_semantics<parallel>], iteration_bounds = array<i64: 1>, scalar_prefetch = 0 : i64, scratch_operands = 0 : i64, tpu.core_type = #tpu.core_type<tc>, window_params = [{transform_indices = @transform_0, window_bounds = array<i64: 16, 1024>}, {pipeline_mode = #tpu.pipeline_mode<synchronous>, transform_indices = @transform_1, window_bounds = array<i64: 1024, 23>}, {pipeline_mode = #tpu.pipeline_mode<synchronous>, transform_indices = @transform_2, window_bounds = array<i64: 1, 23>}, {pipeline_mode = #tpu.pipeline_mode<synchronous>, transform_indices = @transform_3, window_bounds = array<i64: 23, 15>}, {pipeline_mode = #tpu.pipeline_mode<synchronous>, transform_indices = @transform_4, window_bounds = array<i64: 1, 15>}, {pipeline_mode = #tpu.pipeline_mode<synchronous>, transform_indices = @transform_5, window_bounds = array<i64: 15, 10>}, {pipeline_mode = #tpu.pipeline_mode<synchronous>, transform_indices = @transform_6, window_bounds = array<i64: 1, 10>}, {pipeline_mode = #tpu.pipeline_mode<synchronous>, transform_indices = @transform_7, window_bounds = array<i64: 10, 2>}, {pipeline_mode = #tpu.pipeline_mode<synchronous>, transform_indices = @transform_8, window_bounds = array<i64: 1, 2>}, {transform_indices = @transform_9, window_bounds = array<i64: 16, 2>}]} {
    %c0 = arith.constant 0 : index
    %c0_0 = arith.constant 0 : index
    %0 = vector.load %arg1[%c0, %c0_0] : memref<16x1024xbf16, #tpu.memory_space<vmem>>, vector<16x1024xbf16>
    %c0_1 = arith.constant 0 : index
    %c0_2 = arith.constant 0 : index
    %1 = vector.load %arg2[%c0_1, %c0_2] : memref<1024x23xbf16, #tpu.memory_space<vmem>>, vector<1024x23xbf16>
    %cst = arith.constant dense<0.000000e+00> : vector<16x23xf32>
    %2 = tpu.matmul %0, %1, %cst {dimension_numbers = #tpu.dot_dimension_numbers<[1], [0], [0], [1], [0, 0, 1, 1], [], []>} : vector<16x1024xbf16>, vector<1024x23xbf16>, vector<16x23xf32> -> vector<16x23xf32>
    %c0_3 = arith.constant 0 : index
    %c0_4 = arith.constant 0 : index
    %3 = vector.load %arg3[%c0_3, %c0_4] : memref<1x23xf32, #tpu.memory_space<vmem>>, vector<1x23xf32>
    %4 = vector.broadcast %3 : vector<1x23xf32> to vector<16x23xf32>
    %5 = arith.addf %2, %4 : vector<16x23xf32>
    %cst_5 = arith.constant 0.000000e+00 : f32
    %6 = vector.broadcast %cst_5 : f32 to vector<16x23xf32>
    %7 = arith.maximumf %5, %6 : vector<16x23xf32>
    %c0_6 = arith.constant 0 : index
    %c0_7 = arith.constant 0 : index
    %8 = vector.load %arg4[%c0_6, %c0_7] : memref<23x15xf32, #tpu.memory_space<vmem>>, vector<23x15xf32>
    %cst_8 = arith.constant dense<0.000000e+00> : vector<16x15xf32>
    %9 = tpu.matmul %7, %8, %cst_8 {dimension_numbers = #tpu.dot_dimension_numbers<[1], [0], [0], [1], [0, 0, 1, 1], [], []>} : vector<16x23xf32>, vector<23x15xf32>, vector<16x15xf32> -> vector<16x15xf32>
    %c0_9 = arith.constant 0 : index
    %c0_10 = arith.constant 0 : index
    %10 = vector.load %arg5[%c0_9, %c0_10] : memref<1x15xf32, #tpu.memory_space<vmem>>, vector<1x15xf32>
    %11 = vector.broadcast %10 : vector<1x15xf32> to vector<16x15xf32>
    %12 = arith.addf %9, %11 : vector<16x15xf32>
    %cst_11 = arith.constant 0.000000e+00 : f32
    %13 = vector.broadcast %cst_11 : f32 to vector<16x15xf32>
    %14 = arith.maximumf %12, %13 : vector<16x15xf32>
    %c0_12 = arith.constant 0 : index
    %c0_13 = arith.constant 0 : index
    %15 = vector.load %arg6[%c0_12, %c0_13] : memref<15x10xf32, #tpu.memory_space<vmem>>, vector<15x10xf32>
    %cst_14 = arith.constant dense<0.000000e+00> : vector<16x10xf32>
    %16 = tpu.matmul %14, %15, %cst_14 {dimension_numbers = #tpu.dot_dimension_numbers<[1], [0], [0], [1], [0, 0, 1, 1], [], []>} : vector<16x15xf32>, vector<15x10xf32>, vector<16x10xf32> -> vector<16x10xf32>
    %c0_15 = arith.constant 0 : index
    %c0_16 = arith.constant 0 : index
    %17 = vector.load %arg7[%c0_15, %c0_16] : memref<1x10xf32, #tpu.memory_space<vmem>>, vector<1x10xf32>
    %18 = vector.broadcast %17 : vector<1x10xf32> to vector<16x10xf32>
    %19 = arith.addf %16, %18 : vector<16x10xf32>
    %cst_17 = arith.constant 0.000000e+00 : f32
    %20 = vector.broadcast %cst_17 : f32 to vector<16x10xf32>
    %21 = arith.maximumf %19, %20 : vector<16x10xf32>
    %c0_18 = arith.constant 0 : index
    %c0_19 = arith.constant 0 : index
    %22 = vector.load %arg8[%c0_18, %c0_19] : memref<10x2xf32, #tpu.memory_space<vmem>>, vector<10x2xf32>
    %cst_20 = arith.constant dense<0.000000e+00> : vector<16x2xf32>
    %23 = tpu.matmul %21, %22, %cst_20 {dimension_numbers = #tpu.dot_dimension_numbers<[1], [0], [0], [1], [0, 0, 1, 1], [], []>} : vector<16x10xf32>, vector<10x2xf32>, vector<16x2xf32> -> vector<16x2xf32>
    %c0_21 = arith.constant 0 : index
    %c0_22 = arith.constant 0 : index
    %24 = vector.load %arg9[%c0_21, %c0_22] : memref<1x2xf32, #tpu.memory_space<vmem>>, vector<1x2xf32>
    %25 = vector.broadcast %24 : vector<1x2xf32> to vector<16x2xf32>
    %26 = arith.addf %23, %25 : vector<16x2xf32>
    %c0_23 = arith.constant 0 : index
    %c0_24 = arith.constant 0 : index
    %27 = vector.load %arg10[%c0_23, %c0_24] : memref<16x2xf32, #tpu.memory_space<vmem>>, vector<16x2xf32>
    tpu.vector_store %arg10[%c0_23, %c0_24], %26 {strides = array<i32>} : memref<16x2xf32, #tpu.memory_space<vmem>>, vector<16x2xf32>,
    return
  }
  func.func @transform_0(%arg0: i32) -> (i32, i32) {
    %c0_i32 = arith.constant 0 : i32
    %c0_i32_0 = arith.constant 0 : i32
    return %arg0, %c0_i32 : i32, i32
  }
  func.func @transform_1(%arg0: i32) -> (i32, i32) {
    %c0_i32 = arith.constant 0 : i32
    %c0_i32_0 = arith.constant 0 : i32
    %c0_i32_1 = arith.constant 0 : i32
    return %c0_i32, %c0_i32_0 : i32, i32
  }
  func.func @transform_2(%arg0: i32) -> (i32, i32) {
    %c0_i32 = arith.constant 0 : i32
    %c0_i32_0 = arith.constant 0 : i32
    %c0_i32_1 = arith.constant 0 : i32
    return %c0_i32, %c0_i32_0 : i32, i32
  }
  func.func @transform_3(%arg0: i32) -> (i32, i32) {
    %c0_i32 = arith.constant 0 : i32
    %c0_i32_0 = arith.constant 0 : i32
    %c0_i32_1 = arith.constant 0 : i32
    return %c0_i32, %c0_i32_0 : i32, i32
  }
  func.func @transform_4(%arg0: i32) -> (i32, i32) {
    %c0_i32 = arith.constant 0 : i32
    %c0_i32_0 = arith.constant 0 : i32
    %c0_i32_1 = arith.constant 0 : i32
    return %c0_i32, %c0_i32_0 : i32, i32
  }
  func.func @transform_5(%arg0: i32) -> (i32, i32) {
    %c0_i32 = arith.constant 0 : i32
    %c0_i32_0 = arith.constant 0 : i32
    %c0_i32_1 = arith.constant 0 : i32
    return %c0_i32, %c0_i32_0 : i32, i32
  }
  func.func @transform_6(%arg0: i32) -> (i32, i32) {
    %c0_i32 = arith.constant 0 : i32
    %c0_i32_0 = arith.constant 0 : i32
    %c0_i32_1 = arith.constant 0 : i32
    return %c0_i32, %c0_i32_0 : i32, i32
  }
  func.func @transform_7(%arg0: i32) -> (i32, i32) {
    %c0_i32 = arith.constant 0 : i32
    %c0_i32_0 = arith.constant 0 : i32
    %c0_i32_1 = arith.constant 0 : i32
    return %c0_i32, %c0_i32_0 : i32, i32
  }
  func.func @transform_8(%arg0: i32) -> (i32, i32) {
    %c0_i32 = arith.constant 0 : i32
    %c0_i32_0 = arith.constant 0 : i32
    %c0_i32_1 = arith.constant 0 : i32
    return %c0_i32, %c0_i32_0 : i32, i32
  }
  func.func @transform_9(%arg0: i32) -> (i32, i32) {
    %c0_i32 = arith.constant 0 : i32
    %c0_i32_0 = arith.constant 0 : i32
    return %arg0, %c0_i32 : i32, i32
  }
}

</mosaic_0001>

<bundles_post_ra>
// kernel: tpu_custom_call.1
= control target key start
LH: loop header
LB: loop body
LE: loop exit
PB: predicated region body
PF: predicated region fallthrough
CT: control target
= control target key end

     0   :  { %vm783_vm0 = vcmask 1046528   ;;  %vm776_vm1 = vcmask 187392   ;;  %vm873_vm2 = vcmask 121856   ;;  %vm976_vm3 = vcmask 1041408   ;;  %s1640_s1 = inlined_call_operand.vmem [shape: bf16[1024,23], index: 1, kind: input, shape index: {}]   ;;  %s1641_s0 = inlined_call_operand.vmem [shape: bf16[16,1024], index: 0, kind: input, shape index: {}]   ;;  %s1642_s3 = inlined_call_operand.vmem [shape: f32[23,15], index: 3, kind: input, shape index: {}]   ;;  %s1643_s5 = inlined_call_operand.vmem [shape: f32[15,10], index: 5, kind: input, shape index: {}]   ;;  %s1644_s2 = inlined_call_operand.vmem [shape: f32[1,23], index: 2, kind: input, shape index: {}]   ;;  %s1645_s4 = inlined_call_operand.vmem [shape: f32[1,15], index: 4, kind: input, shape index: {}]   ;;  %s1646_s7 = inlined_call_operand.vmem [shape: f32[10,2], index: 7, kind: input, shape index: {}]   ;;  %s1647_s6 = inlined_call_operand.vmem [shape: f32[1,10], index: 6, kind: input, shape index: {}]   ;;  %s1648_s8 = inlined_call_operand.vmem [shape: f32[1,2], index: 8, kind: input, shape index: {}]   ;;  %s1649_s9 = inlined_call_operand.vmem [shape: f32[16,2], index: 9, kind: output, shape index: {}]  }
   0x1   :  { %v1271_v0 = vld [vmem:[%s1640_s1 + $0x78] sm:$0xff]   ;;  %v1275_v4 = vld [vmem:[%s1640_s1 + $0x70] sm:$0xff]   ;;  %v1279_v8 = vld [vmem:[%s1640_s1 + $0x68] sm:$0xff]   ;;  %vm969_vm4 = vcmask 80896   ;;  %vm1055_vm5 = vcmask 15360  }
   0x2   :  { %v1272_v1 = vld [vmem:[%s1640_s1 + $0xf8] sm:$0xff]   ;;  %1147 = vmatprep.subr.bf16.mxu0 %v1271_v0  ;;  %v1276_v5 = vld [vmem:[%s1640_s1 + $0xf0] sm:$0xff]   ;;  %v1280_v9 = vld [vmem:[%s1640_s1 + $0xe8] sm:$0xff]  }
   0x3   :  { %v1273_v2 = vld [vmem:[%s1640_s1 + $0x38] sm:$0xff]   ;;  %1169 = vmatprep.subr.bf16.mxu1 %v1272_v1  ;;  %v1277_v6 = vld [vmem:[%s1640_s1 + $0x30] sm:$0xff]   ;;  %v1281_v10 = vld [vmem:[%s1640_s1 + $0x28] sm:$0xff]  }
   0x4   :  { %v1274_v3 = vld [vmem:[%s1640_s1 + $0xb8] sm:$0xff]   ;;  %1148 = vmatpush3.bf16.msra.mxu0 %v1273_v2  ;;  %v1278_v7 = vld [vmem:[%s1640_s1 + $0xb0] sm:$0xff]   ;;  %v1282_v11 = vld [vmem:[%s1640_s1 + $0xa8] sm:$0xff]  }
   0x5   :  { %1170 = vmatpush3.bf16.msra.mxu1 %v1274_v3  ;;  %1149 = vmatprep.subr.bf16.mxu0 %v1275_v4  ;;  %v1283_v12 = vld [vmem:[%s1640_s1 + $0x60] sm:$0xff]   ;;  %v1287_v16 = vld [vmem:[%s1640_s1 + $0x58] sm:$0xff]   ;;  %v1291_v20 = vld [vmem:[%s1640_s1 + $0x50] sm:$0xff]  }
   0x6   :  { %1171 = vmatprep.subr.bf16.mxu1 %v1276_v5  ;;  %v1284_v13 = vld [vmem:[%s1640_s1 + $0xe0] sm:$0xff]   ;;  %v1288_v17 = vld [vmem:[%s1640_s1 + $0xd8] sm:$0xff]   ;;  %v1292_v21 = vld [vmem:[%s1640_s1 + $0xd0] sm:$0xff]  }
   0x7   :  { %v1285_v14 = vld [vmem:[%s1640_s1 + $0x20] sm:$0xff]   ;;  %v1289_v18 = vld [vmem:[%s1640_s1 + $0x18] sm:$0xff]   ;;  %v1293_v22 = vld [vmem:[%s1640_s1 + $0x10] sm:$0xff]  }
   0x8   :  { %1150 = vmatpush3.bf16.msra.mxu0 %v1277_v6  ;;  %v1286_v15 = vld [vmem:[%s1640_s1 + $0xa0] sm:$0xff]   ;;  %v1290_v19 = vld [vmem:[%s1640_s1 + $0x98] sm:$0xff]   ;;  %v1294_v23 = vld [vmem:[%s1640_s1 + $0x90] sm:$0xff]  }
   0x9   :  { %1172 = vmatpush3.bf16.msra.mxu1 %v1278_v7  ;;  %1151 = vmatprep.subr.bf16.mxu0 %v1279_v8  ;;  %v1295_v24 = vld [vmem:[%s1640_s1 + $0x48] sm:$0xff]   ;;  %v1299_v28 = vld [vmem:[%s1640_s1 + $0x40] sm:$0xff]   ;;  %v1303_v40 = vld [vmem:[%s1640_s1 + $0x178] sm:$0xff]  }
   0xa   :  { %1173 = vmatprep.subr.bf16.mxu1 %v1280_v9  ;;  %v1296_v25 = vld [vmem:[%s1640_s1 + $0xc8] sm:$0xff]   ;;  %v1300_v29 = vld [vmem:[%s1640_s1 + $0xc0] sm:$0xff]   ;;  %v1304_v41 = vld [vmem:[%s1640_s1 + $0x1f8] sm:$0xff]  }
   0xb   :  { %v1297_v26 = vld [vmem:[%s1640_s1 + $0x8] sm:$0xff]   ;;  %v1301_v30 = vld [vmem:[%s1640_s1] sm:$0xff]   ;;  %v1305_v42 = vld [vmem:[%s1640_s1 + $0x138] sm:$0xff]  }
   0xc   :  { %1152 = vmatpush3.bf16.msra.mxu0 %v1281_v10  ;;  %v1298_v27 = vld [vmem:[%s1640_s1 + $0x88] sm:$0xff]   ;;  %v1302_v31 = vld [vmem:[%s1640_s1 + $0x80] sm:$0xff]   ;;  %v1306_v43 = vld [vmem:[%s1640_s1 + $0x1b8] sm:$0xff]  }
   0xd   :  { %1174 = vmatpush3.bf16.msra.mxu1 %v1282_v11  ;;  %1153 = vmatprep.subr.bf16.mxu0 %v1283_v12  ;;  %v33_v32 = vld [vmem:[%s1641_s0] sm:$0xff]  ;;  %v34_v34 = vld [vmem:[%s1641_s0 + $0x8] sm:$0xff]  ;;  %v1307_v44 = vld [vmem:[%s1640_s1 + $0x170] sm:$0xff]  }
   0xe   :  { %1175 = vmatprep.subr.bf16.mxu1 %v1284_v13  ;;  %v37_v33 = vld [vmem:[%s1641_s0 + $0x20] sm:$0xff]  ;;  %v38_v37 = vld [vmem:[%s1641_s0 + $0x28] sm:$0xff]  ;;  %v1308_v45 = vld [vmem:[%s1640_s1 + $0x1f0] sm:$0xff]  }
   0xf   :  { %v1063_v35 = vcombine.low %v33_v32, %v37_v33  ;;  %v1064_v36 = vcombine.high %v33_v32, %v37_v33  ;;  %v1065_v38 = vcombine.low %v34_v34, %v38_v37  ;;  %v1066_v39 = vcombine.high %v34_v34, %v38_v37  ;;  %v1309_v46 = vld [vmem:[%s1640_s1 + $0x130] sm:$0xff]   ;;  %v1311_v48 = vld [vmem:[%s1640_s1 + $0x168] sm:$0xff]   ;;  %v1315_v52 = vld [vmem:[%s1640_s1 + $0x160] sm:$0xff]  }
  0x10   :  { %1154 = vmatpush3.bf16.msra.mxu0 %v1285_v14  ;;  %v1310_v47 = vld [vmem:[%s1640_s1 + $0x1b0] sm:$0xff]   ;;  %v1312_v49 = vld [vmem:[%s1640_s1 + $0x1e8] sm:$0xff]   ;;  %v1316_v53 = vld [vmem:[%s1640_s1 + $0x1e0] sm:$0xff]  }
  0x11   :  { %1176 = vmatpush3.bf16.msra.mxu1 %v1286_v15  ;;  %1155 = vmatprep.subr.bf16.mxu0 %v1287_v16  ;;  %v1313_v50 = vld [vmem:[%s1640_s1 + $0x128] sm:$0xff]   ;;  %v1317_v54 = vld [vmem:[%s1640_s1 + $0x120] sm:$0xff]   ;;  %v1319_v56 = vld [vmem:[%s1640_s1 + $0x158] sm:$0xff]  }
  0x12   :  { %1177 = vmatprep.subr.bf16.mxu1 %v1288_v17  ;;  %632 = vmatprep.mubr.bf16.mxu0 %v1064_v36  ;;  %v1314_v51 = vld [vmem:[%s1640_s1 + $0x1a8] sm:$0xff]   ;;  %v1318_v55 = vld [vmem:[%s1640_s1 + $0x1a0] sm:$0xff]   ;;  %v1320_v57 = vld [vmem:[%s1640_s1 + $0x1d8] sm:$0xff]  }
  0x13   :  { %673 = vmatprep.mubr.bf16.mxu1 %v1066_v39  ;;  %v1321_v58 = vld [vmem:[%s1640_s1 + $0x118] sm:$0xff]   ;;  %v1323_v60 = vld [vmem:[%s1640_s1 + $0x150] sm:$0xff]   ;;  %v1327_v0 = vld [vmem:[%s1640_s1 + $0x148] sm:$0xff]  }
  0x14   :  { %1156 = vmatpush3.bf16.msra.mxu0 %v1289_v18  ;;  %v1322_v59 = vld [vmem:[%s1640_s1 + $0x198] sm:$0xff]   ;;  %v1324_v61 = vld [vmem:[%s1640_s1 + $0x1d0] sm:$0xff]   ;;  %v1328_v1 = vld [vmem:[%s1640_s1 + $0x1c8] sm:$0xff]  }
  0x15   :  { %1178 = vmatpush3.bf16.msra.mxu1 %v1290_v19  ;;  %1157 = vmatprep.subr.bf16.mxu0 %v1291_v20  ;;  %v1325_v62 = vld [vmem:[%s1640_s1 + $0x110] sm:$0xff]   ;;  %v1329_v2 = vld [vmem:[%s1640_s1 + $0x108] sm:$0xff]   ;;  %v1331_v4 = vld [vmem:[%s1640_s1 + $0x140] sm:$0xff]  }
  0x16   :  { %1179 = vmatprep.subr.bf16.mxu1 %v1292_v21  ;;  %v1326_v63 = vld [vmem:[%s1640_s1 + $0x190] sm:$0xff]   ;;  %v1330_v3 = vld [vmem:[%s1640_s1 + $0x188] sm:$0xff]   ;;  %v1332_v5 = vld [vmem:[%s1640_s1 + $0x1c0] sm:$0xff]  }
  0x17   :  { %v1333_v6 = vld [vmem:[%s1640_s1 + $0x100] sm:$0xff]   ;;  %v35_v8 = vld [vmem:[%s1641_s0 + $0x10] sm:$0xff]  ;;  %v36_v12 = vld [vmem:[%s1641_s0 + $0x18] sm:$0xff] }
  0x18   :  { %1158 = vmatpush3.bf16.msra.mxu0 %v1293_v22  ;;  %v1334_v7 = vld [vmem:[%s1640_s1 + $0x180] sm:$0xff]   ;;  %v39_v9 = vld [vmem:[%s1641_s0 + $0x30] sm:$0xff]  ;;  %v40_v13 = vld [vmem:[%s1641_s0 + $0x38] sm:$0xff] }
  0x19   :  { %1180 = vmatpush3.bf16.msra.mxu1 %v1294_v23  ;;  %1159 = vmatprep.subr.bf16.mxu0 %v1295_v24  ;;  %v1067_v10 = vcombine.low %v35_v8, %v39_v9  ;;  %v1068_v11 = vcombine.high %v35_v8, %v39_v9  ;;  %v1069_v14 = vcombine.low %v36_v12, %v40_v13  ;;  %v768_v16 = vld [vmem:[%s1642_s3 + $0x10] sm:$0x7f]  ;;  %v767_v17 = vld [vmem:[%s1642_s3 + $0x8] sm:$0xff]  ;;  %v766_v18 = vld [vmem:[%s1642_s3] sm:$0xff] }
  0x1a   :  { %1181 = vmatprep.subr.bf16.mxu1 %v1296_v25  ;;  %v1070_v15 = vcombine.high %v36_v12, %v40_v13  ;;  %v865_v19 = vld [vmem:[%s1643_s5 + $0x8] sm:$0x7f]  ;;  %v1143_v8 = vld [vmem:[%s1648_s8] ss:$0 sm:$0xff] }
  0x1c   :  { %1160 = vmatpush3.bf16.msra.mxu0 %v1297_v26 }
  0x1d   :  { %1182 = vmatpush3.bf16.msra.mxu1 %v1298_v27  ;;  %1161 = vmatprep.subr.bf16.mxu0 %v1299_v28  ;;  %v1062_v27 = vld [vmem:[%s1644_s2] ss:$0 sm:$0xff] }
  0x1e   :  { %1183 = vmatprep.subr.bf16.mxu1 %v1300_v29 }
  0x20   :  { %1162 = vmatpush3.bf16.msra.mxu0 %v1301_v30 }
  0x21   :  { %1184 = vmatpush3.bf16.msra.mxu1 %v1302_v31  ;;  %1191 = vmatprep.subr.bf16.mxu0 %v1303_v40 }
  0x22   :  { %1213 = vmatprep.subr.bf16.mxu1 %v1304_v41 }
  0x23   :  { %633 = vmatmul.mubr.bf16.vlgmr.msra.gmra.mxu0 %v1063_v35 }
  0x24   :  { %674 = vmatmul.mubr.bf16.vlgmr.msra.gmra.mxu1 %v1065_v38  ;;  %1192 = vmatpush3.bf16.msra.mxu0 %v1305_v42 }
  0x25   :  { %1214 = vmatpush3.bf16.msra.mxu1 %v1306_v43  ;;  %1193 = vmatprep.subr.bf16.mxu0 %v1307_v44 }
  0x26   :  { %1215 = vmatprep.subr.bf16.mxu1 %v1308_v45  ;;  %714 = vmatprep.mubr.bf16.mxu0 %v1068_v11 }
  0x27   :  { %755 = vmatprep.mubr.bf16.mxu1 %v1070_v15 }
  0x28   :  { %1194 = vmatpush3.bf16.msra.mxu0 %v1309_v46 }
  0x29   :  { %1216 = vmatpush3.bf16.msra.mxu1 %v1310_v47  ;;  %1195 = vmatprep.subr.bf16.mxu0 %v1311_v48 }
  0x2a   :  { %1217 = vmatprep.subr.bf16.mxu1 %v1312_v49 }
  0x2c   :  { %1196 = vmatpush3.bf16.msra.mxu0 %v1313_v50 }
  0x2d   :  { %1218 = vmatpush3.bf16.msra.mxu1 %v1314_v51  ;;  %1197 = vmatprep.subr.bf16.mxu0 %v1315_v52 }
  0x2e   :  { %1219 = vmatprep.subr.bf16.mxu1 %v1316_v53 }
  0x30   :  { %1198 = vmatpush3.bf16.msra.mxu0 %v1317_v54 }
  0x31   :  { %1220 = vmatpush3.bf16.msra.mxu1 %v1318_v55  ;;  %1199 = vmatprep.subr.bf16.mxu0 %v1319_v56  ;;  %v864_v55 = vld [vmem:[%s1643_s5] sm:$0xff] }
  0x32   :  { %1221 = vmatprep.subr.bf16.mxu1 %v1320_v57  ;;  %v1135_v56 = vld [vmem:[%s1645_s4] ss:$0 sm:$0xff] }
  0x34   :  { %1200 = vmatpush3.bf16.msra.mxu0 %v1321_v58 }
  0x35   :  { %1222 = vmatpush3.bf16.msra.mxu1 %v1322_v59  ;;  %1201 = vmatprep.subr.bf16.mxu0 %v1323_v60 }
  0x36   :  { %1223 = vmatprep.subr.bf16.mxu1 %v1324_v61 }
  0x38   :  { %1202 = vmatpush3.bf16.msra.mxu0 %v1325_v62 }
  0x39   :  { %1224 = vmatpush3.bf16.msra.mxu1 %v1326_v63  ;;  %1203 = vmatprep.subr.bf16.mxu0 %v1327_v0  ;;  %v961_v63 = vld [vmem:[%s1646_s7 + $0x8] sm:$0x3]  ;;  %v960_v0 = vld [vmem:[%s1646_s7] sm:$0xff] }
  0x3a   :  { %1225 = vmatprep.subr.bf16.mxu1 %v1328_v1  ;;  %v1139_v1 = vld [vmem:[%s1647_s6] ss:$0 sm:$0xff] }
  0x3c   :  { %1204 = vmatpush3.bf16.msra.mxu0 %v1329_v2 }
  0x3d   :  { %1226 = vmatpush3.bf16.msra.mxu1 %v1330_v3  ;;  %1205 = vmatprep.subr.bf16.mxu0 %v1331_v4 }
  0x3e   :  { %1227 = vmatprep.subr.bf16.mxu1 %v1332_v5 }
  0x40   :  { %1206 = vmatpush3.bf16.msra.mxu0 %v1333_v6 }
  0x41   :  { %1228 = vmatpush3.bf16.msra.mxu1 %v1334_v7  ;;  %1248 = vmatprep.subr.msk.mxu0 %vm783_vm0, %v768_v16 }
  0x42   :  { %1257 = vmatprep.subr.msk.mxu1 %vm783_vm0, %v865_v19 }
  0x43   :  { %715 = vmatmul.mubr.bf16.vlgmr.msra.gmra.mxu0 %v1067_v10 }
  0x44   :  { %756 = vmatmul.mubr.bf16.vlgmr.msra.gmra.mxu1 %v1069_v14  ;;  %1249 = vmatpush3.msk.msra.mxu0 %vm783_vm0, %v768_v16 }
  0x45   :  { %1250 = vmatprep.subr.mxu0 %v767_v17  ;;  %1258 = vmatpush3.msk.msra.mxu1 %vm783_vm0, %v865_v19 }
  0x46   :  { %1251 = vmatpush3.msra.mxu0 %v767_v17  ;;  %1259 = vmatprep.subr.mxu1 %v864_v55 }
  0x47   :  { %1252 = vmatprep.subr.mxu0 %v766_v18  ;;  %1260 = vmatpush3.msra.mxu1 %v864_v55 }
  0x48   :  { %1253 = vmatpush3.msra.mxu0 %v766_v18 }
  0x49   :  { %1264 = vmatprep.subr.msk.mxu0 %vm976_vm3, %v961_v63 }
  0xe3   :  { %v1163_v20 = vpop.f32.mrf.mxu0 }
  0xe4   :  { %v1185_v21 = vpop.f32.mrf.mxu1 }
  0xe5   :  { %v1164_v22 = vpop.f32.mrf.mxu0 }
  0xe6   :  { %v1186_v23 = vpop.f32.mrf.mxu1  ;;  %v1165_v25 = vadd.f32 %v1164_v22, %v1163_v20 }
  0xe7   :  { %v1166_v24 = vpop.f32.mrf.mxu0  ;;  %v1187_v30 = vadd.f32 %v1186_v23, %v1185_v21 }
  0xe8   :  { %v1188_v26 = vpop.f32.mrf.mxu1  ;;  %v635_v29 = vadd.f32 %v1165_v25, %v1062_v27 }
  0xe9   :  { %v1167_v28 = vpop.f32.mrf.mxu0 }
  0xea   :  { %v1168_v31 = vadd.f32 %v1167_v28, %v1166_v24  ;;  %v1189_v32 = vpop.f32.mrf.mxu1  ;;  %v676_v36 = vadd.f32 %v1187_v30, %v635_v29 }
  0xeb   :  { %v1190_v41 = vadd.f32 %v1189_v32, %v1188_v26 }
  0xec   :  { %v638_v37 = vadd.f32 %v1168_v31, %v1062_v27 }
  0xee   :  { %v679_v46 = vadd.f32 %v1190_v41, %v638_v37 }
 0x103   :  { %v1207_v33 = vpop.f32.mrf.mxu0 }
 0x104   :  { %v1229_v34 = vpop.f32.mrf.mxu1 }
 0x105   :  { %v1208_v35 = vpop.f32.mrf.mxu0 }
 0x106   :  { %v1209_v38 = vadd.f32 %v1208_v35, %v1207_v33  ;;  %v1230_v39 = vpop.f32.mrf.mxu1 }
 0x107   :  { %v1210_v40 = vpop.f32.mrf.mxu0  ;;  %v1231_v43 = vadd.f32 %v1230_v39, %v1229_v34 }
 0x108   :  { %v717_v42 = vadd.f32 %v1209_v38, %v676_v36  ;;  %v1232_v44 = vpop.f32.mrf.mxu1 }
 0x109   :  { %v1211_v45 = vpop.f32.mrf.mxu0 }
 0x10a   :  { %v758_v47 = vadd.f32 %v1231_v43, %v717_v42  ;;  %v1212_v48 = vadd.f32 %v1211_v45, %v1210_v40  ;;  %v1233_v49 = vpop.f32.mrf.mxu1 }
 0x10b   :  { %v1234_v52 = vadd.f32 %v1233_v49, %v1232_v44 }
 0x10c   :  { %v764_v50 = vmax.f32 %v758_v47, 0.0  ;;  %v720_v51 = vadd.f32 %v1212_v48, %v679_v46 }
 0x10e   :  { %v761_v53 = vadd.f32 %v1234_v52, %v720_v51  ;;  %1254 = vmatprep.mubr.msk.f32.mxu0 %vm776_vm1, %v764_v50 }
 0x110   :  { %v765_v54 = vmax.f32 %v761_v53, 0.0 }
 0x112   :  { %1255 = vmatmul.mubr.msk.f32.vlgmr.msra.gmra.mxu0 %vm776_vm1, %v765_v54 }
 0x113   :  { %1265 = vmatpush3.msk.msra.mxu0 %vm976_vm3, %v961_v63 }
 0x114   :  { %1266 = vmatprep.subr.mxu0 %v960_v0 }
 0x115   :  { %1267 = vmatpush3.msra.mxu0 %v960_v0 }
 0x1d2   :  { %v1256_v57 = vpop.f32.mrf.mxu0 }
 0x1d3   :  { %v859_v58 = vadd.f32 %v1256_v57, %v1135_v56 }
 0x1d4   :  { %v853_v59 = vpop.f32.mrf.mxu0 }
 0x1d5   :  { %v854_v60 = vadd.f32 %v1135_v56, %v853_v59  ;;  %v863_v62 = vmax.f32 %v859_v58, 0.0 }
 0x1d7   :  { %v862_v61 = vmax.f32 %v854_v60, 0.0 }
 0x1d9   :  { %1261 = vmatprep.mubr.msk.f32.mxu1 %vm873_vm2, %v862_v61 }
 0x1da   :  { %1262 = vmatmul.mubr.msk.f32.vlgmr.msra.gmra.mxu1 %vm873_vm2, %v863_v62 }
 0x29a   :  { %v1263_v2 = vpop.f32.mrf.mxu1 }
 0x29b   :  { %v955_v3 = vadd.f32 %v1263_v2, %v1139_v1 }
 0x29c   :  { %v949_v4 = vpop.f32.mrf.mxu1 }
 0x29d   :  { %v950_v5 = vadd.f32 %v1139_v1, %v949_v4  ;;  %v959_v7 = vmax.f32 %v955_v3, 0.0 }
 0x29f   :  { %v958_v6 = vmax.f32 %v950_v5, 0.0 }
 0x2a1   :  { %1268 = vmatprep.mubr.msk.f32.mxu0 %vm969_vm4, %v958_v6 }
 0x2a2   :  { %1269 = vmatmul.mubr.msk.f32.vlgmr.msra.gmra.mxu0 %vm969_vm4, %v959_v7 }
 0x362   :  { %v1270_v9 = vpop.f32.mrf.mxu0 }
 0x363   :  { %v1052_v10 = vadd.f32 %v1270_v9, %v1143_v8 }
 0x364   :  { %v1046_v11 = vpop.f32.mrf.mxu0 }
 0x365   :  { %1057 = vst.msk [vmem:[%s1649_s9 + $0x8] sm:$0xff] %vm1055_vm5, %v1052_v10  ;;  %v1047_v12 = vadd.f32 %v1143_v8, %v1046_v11 }
 0x367   :  { %1056 = vst.msk [vmem:[%s1649_s9] sm:$0xff] %vm1055_vm5, %v1047_v12 }

</bundles_post_ra>
